<compile_context>
chip_gen: v6e
topology: v6e:2x2x1
jax: 0.10.0
libtpu: 0.0.40
codegen_flags: <defaults>
</compile_context>

<pallas_src>
import functools

import jax
import jax.numpy as jnp
from jax import lax
from jax.experimental import pallas as pl
from jax.experimental.pallas import tpu as pltpu


def _round_up(n, m):
    return (n + m - 1) // m * m


def _cdiv(a, b):
    return (a + b - 1) // b


def _sublane_min(dtype):
    # Minimum second-to-last tile dim: 8 (4-byte), 16 (2-byte), 32 (1-byte).
    return {4: 8, 2: 16, 1: 32}.get(jnp.dtype(dtype).itemsize, 8)


def _clamp_sign(raw, gamma):
    # gamma * (-dist) has a fixed sign; the clamp guards against catastrophic
    # cancellation in the expanded form making tiny distances cross zero.
    if gamma >= 0.0:
        return jnp.minimum(raw, 0.0)
    return jnp.maximum(raw, 0.0)


def _cluster_kernel_fused(x_ref, c_ref, gx2_ref, gc2_ref, o_ref, *, gamma):
    """Single F-chunk step: one MXU contraction + epilogue, no scratch.

    x_ref  : (tb, F)  activation tile
    c_ref  : (tk, F)  cluster tile
    gx2_ref: (tb, 1)  precomputed gamma * ||x_b||^2  (f32)
    gc2_ref: (1, tk)  precomputed gamma * ||c_k||^2  (f32)
    o_ref  : (tb, tk) output tile
    """
    xc = lax.dot_general(
        x_ref[...], c_ref[...],
        dimension_numbers=(((1,), (1,)), ((), ())),
        preferred_element_type=jnp.float32,
    )
    raw = (2.0 * gamma) * xc - gx2_ref[...] - gc2_ref[...]
    o_ref[...] = _clamp_sign(raw, gamma).astype(o_ref.dtype)


def _cluster_kernel_acc(x_ref, c_ref, gx2_ref, gc2_ref, o_ref, acc_ref, *,
                        gamma):
    """Multi F-chunk step: accumulate raw x.c only; epilogue once at the end.

    acc_ref: (tb, tk) f32 accumulator, resident across the F axis.
    """
    fk = pl.program_id(2)

    @pl.when(fk == 0)
    def _init():
        acc_ref[...] = jnp.zeros_like(acc_ref)

    acc_ref[...] += lax.dot_general(
        x_ref[...], c_ref[...],
        dimension_numbers=(((1,), (1,)), ((), ())),
        preferred_element_type=jnp.float32,
    )

    @pl.when(fk == pl.num_programs(2) - 1)
    def _finalize():
        raw = (2.0 * gamma) * acc_ref[...] - gx2_ref[...] - gc2_ref[...]
        o_ref[...] = _clamp_sign(raw, gamma).astype(o_ref.dtype)


def cluster_layer_forward(x, clusters, gamma=1.0, *,
                          block_b=None, block_k=None, block_f=None,
                          cluster_resident_bytes=4 * 1024 * 1024,
                          vmem_budget_bytes=24 * 1024 * 1024,
                          compute_dtype=None,
                          vmem_limit_bytes=None):
    """Pallas equivalent of ClusterLayer.forward with squared-L2 distance.

    block_* default to an automatic plan: full-B / full-K / full-F residency
    whenever it fits `vmem_budget_bytes` (conservative for v5e's 16 MiB scoped
    default and v7x's 64 MiB physical VMEM), falling back to 512-wide B/K
    tiles and a lane-aligned F chunk otherwise.  `compute_dtype=jnp.bfloat16`
    optionally feeds the MXU bf16 operands (3-6x on all generations) while the
    norm epilogue stays f32.  For production shapes prefer tiles that divide
    B/F so the wrapper never has to jnp.pad the activation.
    """
    B, F = x.shape
    K, Fc = clusters.shape
    assert F == Fc, "feature_size mismatch"

    out_dtype = x.dtype
    if compute_dtype is not None:
        x = x.astype(compute_dtype)
        clusters = clusters.astype(compute_dtype)

    itemsize = jnp.dtype(x.dtype).itemsize
    c_itemsize = jnp.dtype(clusters.dtype).itemsize
    sub = _sublane_min(x.dtype)
    gamma = float(gamma)

    # ----- tile plan --------------------------------------------------------
    # B tile: full B when it fits one block (no padding / masked rows),
    # otherwise a dtype-aware sublane-aligned tile.
    tgt_b = 512 if block_b is None else int(block_b)
    tb = B if B <= tgt_b else max(sub, (tgt_b // sub) * sub)

    # K tile: keep the whole cluster table resident when it is small (fetched
    # once; only x streams), otherwise a lane-aligned (multiple of 128) tile.
    if block_k is None:
        k_resident = K * F * c_itemsize <= cluster_resident_bytes
        tk = K if (K <= 512 or k_resident) else 512
    else:
        tk = K if int(block_k) >= K else max(128, (int(block_k) // 128) * 128)

    # F tile: largest chunk keeping (double-buffered x/c/out + f32 acc) under
    # the VMEM budget; whole-F residency drops the reduction grid axis.
    budget = (vmem_budget_bytes if vmem_limit_bytes is None
              else int(vmem_limit_bytes) * 3 // 4)
    fixed = 2 * tb * tk * itemsize + 2 * (tb + tk) * 4 + tb * tk * 4
    avail = max(budget - fixed, 0)
    tf_cap = avail // max(2 * (tb + tk) * itemsize, 1)
    tf = F if tf_cap >= F else max(128, (tf_cap // 128) * 128)
    if block_f is not None:
        cap = F if int(block_f) >= F else max(128, (int(block_f) // 128) * 128)
        tf = min(tf, cap)
    tf = min(tf, F)
    multi_f = tf < F

    # Megacore (v7x): if both parallel axes collapse to one block, split K so
    # the two TensorCores both get work (no-op on v5e/v6e).
    if B <= tb and tk >= K and K >= 256:
        half = _round_up(_cdiv(K, 2), 128)
        if half < K:
            tk = half

    # ----- padding (only on axes that are actually tiled) -------------------
    Bp = B if tb >= B else _round_up(B, tb)
    Kp = K if tk >= K else _round_up(K, tk)
    Fp = F if not multi_f else _round_up(F, tf)

    x_p = x if (Bp, Fp) == (B, F) else jnp.pad(x, ((0, Bp - B), (0, Fp - F)))
    c_p = clusters if (Kp, Fp) == (K, F) else jnp.pad(
        clusters, ((0, Kp - K), (0, Fp - F)))

    # Hoisted, gamma-folded norms (f32): tiny side inputs for the epilogue.
    xf = x_p.astype(jnp.float32)
    gx2 = gamma * jnp.sum(xf * xf, axis=-1, keepdims=True)        # (Bp, 1)
    cf = c_p.astype(jnp.float32)
    gc2 = (gamma * jnp.sum(cf * cf, axis=-1))[None, :]            # (1, Kp)

    grid_b = Bp // tb
    grid_k = Kp // tk

    if multi_f:
        grid = (grid_b, grid_k, Fp // tf)
        in_specs = [
            pl.BlockSpec((tb, tf), lambda i, j, k: (i, k)),       # x
            pl.BlockSpec((tk, tf), lambda i, j, k: (j, k)),       # clusters
            pl.BlockSpec((tb, 1), lambda i, j, k: (i, 0)),        # gamma*||x||^2
            pl.BlockSpec((1, tk), lambda i, j, k: (0, j)),        # gamma*||c||^2
        ]
        out_specs = pl.BlockSpec((tb, tk), lambda i, j, k: (i, j))
        scratch_shapes = [pltpu.VMEM((tb, tk), jnp.float32)]
        dims = ("parallel", "parallel", "arbitrary")
        kernel = functools.partial(_cluster_kernel_acc, gamma=gamma)
        x_bytes = grid_k * Bp * Fp * itemsize      # x re-read per K tile
    else:
        grid = (grid_b, grid_k)
        in_specs = [
            pl.BlockSpec((tb, tf), lambda i, j: (i, 0)),          # x
            pl.BlockSpec((tk, tf), lambda i, j: (j, 0)),          # clusters
            pl.BlockSpec((tb, 1), lambda i, j: (i, 0)),           # gamma*||x||^2
            pl.BlockSpec((1, tk), lambda i, j: (0, j)),           # gamma*||c||^2
        ]
        out_specs = pl.BlockSpec((tb, tk), lambda i, j: (i, j))
        scratch_shapes = []
        dims = ("parallel", "parallel")
        kernel = functools.partial(_cluster_kernel_fused, gamma=gamma)
        x_bytes = Bp * Fp * itemsize               # x block reused across j

    out_sz = jnp.dtype(out_dtype).itemsize
    cost = pl.CostEstimate(
        flops=int(2 * Bp * Kp * Fp + 4 * Bp * Kp),
        transcendentals=0,
        bytes_accessed=int(x_bytes
                           + grid_b * Kp * Fp * c_itemsize   # c re-read per B tile
                           + Bp * 4 + grid_b * Kp * 4        # gx2 / gc2
                           + Bp * Kp * out_sz),               # output
    )

    footprint = (2 * (tb * tf + tk * tf + tb * tk) * itemsize
                 + 2 * (tb + tk) * 4
                 + (tb * tk * 4 if multi_f else 0))
    if vmem_limit_bytes is None:
        # Explicit, footprint-derived limit; capped well under v7x's 64 MiB.
        vmem_limit_bytes = min(max(2 * footprint, 16 << 20), 48 << 20)

    out_p = pl.pallas_call(
        kernel,
        out_shape=jax.ShapeDtypeStruct((Bp, Kp), out_dtype),
        grid=grid,
        in_specs=in_specs,
        out_specs=out_specs,
        scratch_shapes=scratch_shapes,
        compiler_params=pltpu.CompilerParams(
            dimension_semantics=dims,
            vmem_limit_bytes=int(vmem_limit_bytes)),
        cost_estimate=cost,
    )(x_p, c_p, gx2, gc2)

    return out_p if (Bp, Kp) == (B, K) else out_p[:B, :K]


def cluster_layer_reference(x, clusters, gamma=1.0):
    """Pure-JAX reference matching the PyTorch forward (squared-L2)."""
    x_exp = x[:, None, :]                               # (B, 1, F)
    c_exp = clusters[None, :, :]                        # (1, K, F)
    dist = jnp.sum((x_exp - c_exp) ** 2, axis=-1)       # (B, K)
    return gamma * (-dist)


if __name__ == "__main__":
    # Small deterministic shapes consistent with the module.
    batch, cluster_num, feature_size = 2, 4, 32
    gamma = 1.0

    key = jax.random.PRNGKey(0)
    kx, kc = jax.random.split(key)
    x = jax.random.normal(kx, (batch, feature_size), dtype=jnp.float32)

    # Module __init__ (data_config='zeros'): clusters start at zero.
    clusters_zero = jnp.zeros((cluster_num, feature_size), dtype=jnp.float32)
    out0 = jax.block_until_ready(
        cluster_layer_forward(x, clusters_zero, gamma=gamma))
    ref0 = cluster_layer_reference(x, clusters_zero, gamma=gamma)
    assert out0.shape == (batch, cluster_num), out0.shape
    assert jnp.allclose(out0, ref0, atol=1e-5, rtol=1e-5), (out0, ref0)

    # Non-trivial clusters for a stronger numerical check of the same forward.
    clusters_rand = jax.random.normal(
        kc, (cluster_num, feature_size), dtype=jnp.float32)
    out1 = jax.block_until_ready(
        cluster_layer_forward(x, clusters_rand, gamma=gamma))
    ref1 = cluster_layer_reference(x, clusters_rand, gamma=gamma)
    assert jnp.allclose(out1, ref1, atol=1e-4, rtol=1e-4), (out1, ref1)

    # Exercise the tiled / multi-F accumulator path (padding + pl.when init
    # and finalize) with explicit small blocks.
    kb, kc2 = jax.random.split(kc)
    xb = jax.random.normal(kb, (16, 384), dtype=jnp.float32)
    cb = jax.random.normal(kc2, (200, 384), dtype=jnp.float32)
    out2 = jax.block_until_ready(
        cluster_layer_forward(xb, cb, gamma=0.5,
                              block_b=8, block_k=128, block_f=128))
    ref2 = cluster_layer_reference(xb, cb, gamma=0.5)
    assert out2.shape == ref2.shape, (out2.shape, ref2.shape)
    assert jnp.allclose(out2, ref2, atol=1e-2, rtol=1e-3), (out2, ref2)

    print("KERNEL_OK")
</pallas_src>

<mosaic_0001>
module attributes {stable_mosaic.version = 11 : i64} {
  func.func @_cluster_kernel_fused(%arg0: i32, %arg1: i32, %arg2: memref<2x32xf32, #tpu.memory_space<vmem>>, %arg3: memref<4x32xf32, #tpu.memory_space<vmem>>, %arg4: memref<2x1xf32, #tpu.memory_space<vmem>>, %arg5: memref<1x4xf32, #tpu.memory_space<vmem>>, %arg6: memref<2x4xf32, #tpu.memory_space<vmem>>) attributes {dimension_semantics = [#tpu.dimension_semantics<parallel>, #tpu.dimension_semantics<parallel>], iteration_bounds = array<i64: 1, 1>, scalar_prefetch = 0 : i64, scratch_operands = 0 : i64, tpu.core_type = #tpu.core_type<tc>, window_params = [{transform_indices = @transform_0, window_bounds = array<i64: 2, 32>}, {transform_indices = @transform_1, window_bounds = array<i64: 4, 32>}, {transform_indices = @transform_2, window_bounds = array<i64: 2, 1>}, {transform_indices = @transform_3, window_bounds = array<i64: 1, 4>}, {transform_indices = @transform_4, window_bounds = array<i64: 2, 4>}]} {
    %c0 = arith.constant 0 : index
    %c0_0 = arith.constant 0 : index
    %0 = vector.load %arg2[%c0, %c0_0] : memref<2x32xf32, #tpu.memory_space<vmem>>, vector<2x32xf32>
    %c0_1 = arith.constant 0 : index
    %c0_2 = arith.constant 0 : index
    %1 = vector.load %arg3[%c0_1, %c0_2] : memref<4x32xf32, #tpu.memory_space<vmem>>, vector<4x32xf32>
    %cst = arith.constant dense<0.000000e+00> : vector<2x4xf32>
    %2 = tpu.matmul %0, %1, %cst {dimension_numbers = #tpu.dot_dimension_numbers<[1], [1], [0], [0], [0, 0, 1, 0], [], []>} : vector<2x32xf32>, vector<4x32xf32>, vector<2x4xf32> -> vector<2x4xf32>
    %cst_3 = arith.constant 2.000000e+00 : f32
    %3 = vector.broadcast %cst_3 : f32 to vector<2x4xf32>
    %4 = arith.mulf %3, %2 : vector<2x4xf32>
    %c0_4 = arith.constant 0 : index
    %c0_5 = arith.constant 0 : index
    %5 = vector.load %arg4[%c0_4, %c0_5] : memref<2x1xf32, #tpu.memory_space<vmem>>, vector<2x1xf32>
    %6 = vector.broadcast %5 : vector<2x1xf32> to vector<2x4xf32>
    %7 = arith.subf %4, %6 : vector<2x4xf32>
    %c0_6 = arith.constant 0 : index
    %c0_7 = arith.constant 0 : index
    %8 = vector.load %arg5[%c0_6, %c0_7] : memref<1x4xf32, #tpu.memory_space<vmem>>, vector<1x4xf32>
    %9 = vector.broadcast %8 : vector<1x4xf32> to vector<2x4xf32>
    %10 = arith.subf %7, %9 : vector<2x4xf32>
    %cst_8 = arith.constant 0.000000e+00 : f32
    %11 = vector.broadcast %cst_8 : f32 to vector<2x4xf32>
    %12 = arith.minimumf %10, %11 : vector<2x4xf32>
    %c0_9 = arith.constant 0 : index
    %c0_10 = arith.constant 0 : index
    %13 = vector.load %arg6[%c0_9, %c0_10] : memref<2x4xf32, #tpu.memory_space<vmem>>, vector<2x4xf32>
    tpu.vector_store %arg6[%c0_9, %c0_10], %12 {strides = array<i32>} : memref<2x4xf32, #tpu.memory_space<vmem>>, vector<2x4xf32>,
    return
  }
  func.func @transform_0(%arg0: i32, %arg1: i32) -> (i32, i32) {
    %c0_i32 = arith.constant 0 : i32
    %c0_i32_0 = arith.constant 0 : i32
    return %arg0, %c0_i32 : i32, i32
  }
  func.func @transform_1(%arg0: i32, %arg1: i32) -> (i32, i32) {
    %c0_i32 = arith.constant 0 : i32
    %c0_i32_0 = arith.constant 0 : i32
    return %arg1, %c0_i32 : i32, i32
  }
  func.func @transform_2(%arg0: i32, %arg1: i32) -> (i32, i32) {
    %c0_i32 = arith.constant 0 : i32
    %c0_i32_0 = arith.constant 0 : i32
    return %arg0, %c0_i32 : i32, i32
  }
  func.func @transform_3(%arg0: i32, %arg1: i32) -> (i32, i32) {
    %c0_i32 = arith.constant 0 : i32
    %c0_i32_0 = arith.constant 0 : i32
    return %c0_i32, %arg1 : i32, i32
  }
  func.func @transform_4(%arg0: i32, %arg1: i32) -> (i32, i32) {
    %c0_i32 = arith.constant 0 : i32
    return %arg0, %arg1 : i32, i32
  }
}

</mosaic_0001>

<bundles_post_ra>
// kernel: tpu_custom_call.1
= control target key start
LH: loop header
LB: loop body
LE: loop exit
PB: predicated region body
PF: predicated region fallthrough
CT: control target
= control target key end

     0   :  { %9 = vsyncpa [#allocation3], 0  ;;  %s248_s0 = inlined_call_operand.hbm [shape: f32[2,32], index: 0, kind: input, shape index: {}]   ;;  %s249_s1 = inlined_call_operand.vmem [shape: f32[4,32], index: 1, kind: input, shape index: {}]   ;;  %s250_s2 = inlined_call_operand.vmem [shape: f32[2,1], index: 2, kind: input, shape index: {}]   ;;  %s251_s3 = inlined_call_operand.vmem [shape: f32[1,4], index: 3, kind: input, shape index: {}]   ;;  %s252_s4 = inlined_call_operand.hbm [shape: f32[2,4], index: 4, kind: output, shape index: {}]  }
   0x1   :  { %10 = vsyncpa [#allocation4], 0  ;;  %s203_s15 = smov [#allocation2]  }
   0x2   :  { %s17_s16 = sshll.u32 %s203_s15, 4  ;;  %s18_s16 = int_to_ptr.vmem [resolvable:$true] %s17_s16 }
   0x3   :  { %s167_s17 = scalar_lea.vmem %s18_s16, 32  ;;  %p172_p1 = scmp.lt.s32.totalorder %s18_s16, %s18_s16 }
   0x4   :  { %p168_p0 = scmp.ne.s32.totalorder %s18_s16, %s167_s17  ;;  %p173_p2 = scmp.lt.s32.totalorder %s167_s17, %s167_s17 }
   0x6   :  { %p174_p3 = por %p173_p2, %p172_p1 }
   0x8   :  { %p175_p4 = pnand %p174_p3, %p168_p0 }
   0xa   :  { %178 = shalt.err (!%p175_p4)
}
   0xb   :  { %20 = dma.hbm_to_vmem [thread:$0]  %s248_s0, 32, %s18_s16, [#allocation3]  }
   0xc   :  { %199 = dma.done.wait [#allocation3], 32  }
   0xd   :  { %200 = vsyncadd [#allocation3], 4294967264  ;;  %v204_v0 = vmov 0.0   ;;  %vm205_vm0 = vmmov 0   ;;  %v206_v1 = vmov 0   ;;  %vm32_vm1 = vcmask 261120  }
   0xe   :  { %148 = vmatprep.subr.mxu0 %v204_v0  ;;  %150 = vmatprep.mubr.msk.f32.mxu0 %vm205_vm0, %v204_v0  ;;  %v31_v2 = vld [vmem:[%s249_s1] sm:$0xf]  ;;  %s207_s25 = smov [#allocation5]   ;;  %vm126_vm2 = vcmask 25600  }
   0xf   :  { %158 = vset.pattern.permute.xlu0 %v206_v1  ;;  %v110_v3 = vld [vmem:[%s250_s2] sm:$0x3]  ;;  %149 = vmatpush3.xpose.msk.msra.mxu0 %vm32_vm1, %v31_v2  ;;  %s134_s26 = sshll.u32 %s207_s25, 4  ;;  %s135_s26 = int_to_ptr.vmem [resolvable:$true] %s134_s26 }
  0x10   :  { %v30_v4 = vld [vmem:[#allocation2] sm:$0x3]  ;;  %113 = vperm.xlu0 %158, %v110_v3   ;;  %s179_s1 = scalar_lea.vmem %s135_s26, 32  ;;  %p184_p6 = scmp.lt.s32.totalorder %s135_s26, %s135_s26 }
  0x11   :  { %v145_v8 = vld [vmem:[%s251_s3] ss:$0 sm:$0xff]  ;;  %p180_p5 = scmp.ne.s32.totalorder %s135_s26, %s179_s1  ;;  %p185_p7 = scmp.lt.s32.totalorder %s179_s1, %s179_s1 }
  0x12   :  { %151 = vmatmul.mubr.msk.f32.vlgmr.msra.gmra.mxu0 %vm32_vm1, %v30_v4 }
  0x13   :  { %p186_p8 = por %p185_p7, %p184_p6 }
  0x15   :  { %p187_p9 = pnand %p186_p8, %p180_p5 }
  0x8b   :  { %v114_v6 = vpop.permute.xlu0 %113 }
  0xd2   :  { %v105_v5 = vpop.f32.mrf.mxu0 }
  0xd3   :  { %v109_v7 = vmul.f32 2.0, %v105_v5 }
  0xd4   :  { %v152_v9 = vpop.f32.mrf.mxu0 }
  0xd5   :  { %v116_v10 = vsub.f32 %v109_v7, %v114_v6 }
  0xd7   :  { %v124_v11 = vsub.f32 %v116_v10, %v145_v8 }
  0xd9   :  { %v125_v12 = vmin.f32 %v124_v11, 0.0 }
  0xdb   :  { %127 = vst.msk [vmem:[#allocation5] sm:$0x3] %vm126_vm2, %v125_v12 }
  0xdc   :  { %190 = shalt.err (!%p187_p9)
}
  0xdd   :  { %137 = dma.vmem_to_hbm [thread:$0]  %s135_s26, 32, %s252_s4, [#allocation4]  }
  0xde   :  { %201 = dma.done.wait [#allocation4], 32  }
  0xdf   :  { %202 = vsyncadd [#allocation4], 4294967264 }
  0xe0   :  { %141 = vsyncpa [#allocation3], 1 }
  0xe1   :  { %142 = vsyncpa [#allocation4], 1 }

</bundles_post_ra>
